<compile_context>
chip_gen: v7x
topology: tpu7x:2x2x1
jax: 0.10.0
libtpu: 0.0.40
codegen_flags: <defaults>
</compile_context>

<pallas_src>
import jax
import jax.numpy as jnp
import numpy as np
from jax.experimental import pallas as pl
from jax.experimental.pallas import tpu as pltpu


# ------------------ kernel 1: x^T = W^T @ X^T (encoder matmul #1) ------------------
def _xt_kernel(wt_ref, xt_in_ref, xt_ref):
    xt_ref[...] = jnp.dot(wt_ref[...], xt_in_ref[...],
                          preferred_element_type=jnp.float32).astype(xt_ref.dtype)


# ------ kernel 2: z^T = x^T @ adj^T (column block) + packed score/gather tables ------
def _encode_pack_kernel(xt_ref, adjt_ref, v2a_ref, v2b_ref, w3b_ref, ti_ref, tj_ref):
    # z^T block: (H, TM) = x^T (H, N, resident) @ adj^T column block (N, TM); f32 acc.
    zt = jnp.dot(xt_ref[...], adjt_ref[...], preferred_element_type=jnp.float32)
    zrt = jnp.maximum(zt, 0.0)
    # Folded decoder chain:  rs = relu(z) @ (W2a@W3a),  cs = relu(z) @ (W2b@W3a)
    # as a VPU multiply + sublane (XLU) reduce -> (1, TM) each (no MXU involved).
    rs = jnp.sum(zrt * v2a_ref[...], axis=0, keepdims=True)
    cs = jnp.sum(zrt * v2b_ref[...], axis=0, keepdims=True)
    ones = jnp.ones_like(rs)
    # Packed gather tables (H+2, TM): table_i = [z*w3b ; rs ; 1], table_j = [z ; 1 ; cs]
    ti_ref[...] = jnp.concatenate([zt * w3b_ref[...], rs, ones], axis=0).astype(ti_ref.dtype)
    tj_ref[...] = jnp.concatenate([zt, ones, cs], axis=0).astype(tj_ref.dtype)


# ----------------------------- kernel 3: edge decoder -------------------------------
def _edge_decode_kernel(ei_ref, ej_ref, ti_ref, tj_ref, o_ref):
    n = ti_ref.shape[1]
    te = ei_ref.shape[1]
    # One-hot gather of table COLUMNS on the MXU (no dynamic vector gather on TPU).
    # Node ids vary along sublanes, edges along lanes -> (N, TE) one-hots, so the MXU
    # output has TE on the full lane axis.
    # TODO(synk): edge indices >= N silently select a zero column; add pl.debug_check
    # under pl.enable_debug_checks() if untrusted edge lists are possible.
    node_ids = jax.lax.broadcasted_iota(jnp.int32, (n, te), 0)
    oh_i = (node_ids == ei_ref[...]).astype(ti_ref.dtype)                 # (N, TE)
    oh_j = (node_ids == ej_ref[...]).astype(tj_ref.dtype)                 # (N, TE)
    gi = jnp.dot(ti_ref[...], oh_i, preferred_element_type=jnp.float32)   # (H+2, TE)
    gj = jnp.dot(tj_ref[...], oh_j, preferred_element_type=jnp.float32)   # (H+2, TE)
    # logit[e] = (z[i]*w3b).z[j] + rs[i] + cs[j]   (sublane reduce -> XLU slot)
    logits = jnp.sum(gi * gj, axis=0, keepdims=True)                      # (1, TE)
    o_ref[...] = jax.nn.sigmoid(logits)[None].astype(o_ref.dtype)         # (1, 1, TE)


# --------------------------------- model glue ------------------------------------
def _pick_node_tile(n, desired):
    for t in (desired, 512, 256, 128):
        if t <= n and n % t == 0 and t % 128 == 0:
            return t
    return n  # full extent — always a legal block


def neural_encoder_decoder_forward(x, adj, weight, weight_two, weight_three,
                                   train_edges, train_false_edges, *,
                                   edge_tile=256, node_tile=256,
                                   compute_dtype=jnp.bfloat16):
    """Forward pass of NeuralEncoderDecoder. Returns sigmoid scores of shape (E, 1)."""
    assert edge_tile % 128 == 0
    f32 = jnp.float32
    cdt = compute_dtype
    N = adj.shape[0]
    Din, H = weight.shape

    # ---- wrapper-side algebraic fold of the decoder weight chain ----
    w2 = jnp.asarray(weight_two, f32)
    w3 = jnp.asarray(weight_three, f32)
    v2a = w2[:H] @ w3[:H]               # (H, 1)  = W2[:H] @ W3[:H]
    v2b = w2[H:] @ w3[:H]               # (H, 1)  = W2[H:] @ W3[:H]
    w3b = w3[H:].reshape(H, 1)          # (H, 1)  = W3[H:]

    # Transposed (feature-on-sublane x node-on-lane) operands, cast to the MXU dtype.
    wT = jnp.asarray(weight, f32).T.astype(cdt)      # (H, Din)
    xT_in = jnp.asarray(x, f32).T.astype(cdt)        # (Din, N)
    adjT = jnp.asarray(adj, f32).T.astype(cdt)       # (N, N)

    tm = _pick_node_tile(N, node_tile)
    n_node_tiles = N // tm

    # ---- launch 1: x^T = W^T @ X^T, gridded over node column blocks ----
    xt = pl.pallas_call(
        _xt_kernel,
        out_shape=jax.ShapeDtypeStruct((H, N), cdt),
        grid=(n_node_tiles,),
        in_specs=[pl.BlockSpec((H, Din), lambda i: (0, 0)),
                  pl.BlockSpec((Din, tm), lambda i: (0, i))],
        out_specs=pl.BlockSpec((H, tm), lambda i: (0, i)),
        compiler_params=pltpu.CompilerParams(dimension_semantics=("parallel",)),
    )(wT, xT_in)

    # ---- launch 2: z^T = x^T @ adj^T + packed score tables, gridded over node blocks ----
    ti, tj = pl.pallas_call(
        _encode_pack_kernel,
        out_shape=(jax.ShapeDtypeStruct((H + 2, N), cdt),
                   jax.ShapeDtypeStruct((H + 2, N), cdt)),
        grid=(n_node_tiles,),
        in_specs=[pl.BlockSpec((H, N), lambda i: (0, 0)),     # x^T, resident across grid
                  pl.BlockSpec((N, tm), lambda i: (0, i)),    # adj^T column block
                  pl.BlockSpec((H, 1), lambda i: (0, 0)),     # v2a = W2a @ W3a
                  pl.BlockSpec((H, 1), lambda i: (0, 0)),     # v2b = W2b @ W3a
                  pl.BlockSpec((H, 1), lambda i: (0, 0))],    # w3b = W3[H:]
        out_specs=(pl.BlockSpec((H + 2, tm), lambda i: (0, i)),
                   pl.BlockSpec((H + 2, tm), lambda i: (0, i))),
        compiler_params=pltpu.CompilerParams(
            dimension_semantics=("parallel",),
            vmem_limit_bytes=32 * 1024 * 1024),
    )(xt, adjT, v2a, v2b, w3b)

    # ---- launch 3: per-edge decoder, tiled over lane-dense edge_tile blocks ----
    edges = jnp.concatenate([jnp.asarray(train_edges, jnp.int32),
                             jnp.asarray(train_false_edges, jnp.int32)], axis=0)   # (E, 2)
    E = edges.shape[0]
    n_tiles = int(pl.cdiv(E, edge_tile))
    E_pad = n_tiles * edge_tile
    # Padded edges reference node 0; their outputs are computed and sliced off below.
    ei = jnp.pad(edges[:, 0], (0, E_pad - E)).reshape(1, E_pad)
    ej = jnp.pad(edges[:, 1], (0, E_pad - E)).reshape(1, E_pad)

    out = pl.pallas_call(
        _edge_decode_kernel,
        out_shape=jax.ShapeDtypeStruct((n_tiles, 1, edge_tile), f32),
        grid=(n_tiles,),
        in_specs=[
            pl.BlockSpec((1, edge_tile), lambda t: (0, t)),   # edge src indices (lane-dense)
            pl.BlockSpec((1, edge_tile), lambda t: (0, t)),   # edge dst indices
            # Grid-invariant gather tables, VMEM-resident across the edge grid.
            # TODO(synk): pipeline_mode=pl.Buffered(1) on these two specs would drop the
            # pointless double-buffer (halves their VMEM; matters under v5e's 16 MiB
            # scoped default) once single-buffered pipelining is relied upon.
            pl.BlockSpec((H + 2, N), lambda t: (0, 0)),
            pl.BlockSpec((H + 2, N), lambda t: (0, 0)),
        ],
        out_specs=pl.BlockSpec((1, 1, edge_tile), lambda t: (t, 0, 0)),
        compiler_params=pltpu.CompilerParams(
            dimension_semantics=("parallel",),
            vmem_limit_bytes=32 * 1024 * 1024),
    )(ei, ej, ti, tj)

    return out.reshape(E_pad, 1)[:E]


# pure-JAX reference matching the literal torch code (per-edge cat / relu / mm / sigmoid)
def forward_ref(x, adj, weight, weight_two, weight_three, train_edges, train_false_edges):
    z = adj @ (x @ weight)
    edges = jnp.concatenate([jnp.asarray(train_edges), jnp.asarray(train_false_edges)], axis=0)
    zi = z[edges[:, 0]]
    zj = z[edges[:, 1]]
    z_pair = jax.nn.relu(jnp.concatenate([zi, zj], axis=1)) @ weight_two
    s = jnp.concatenate([z_pair, zi * zj], axis=1) @ weight_three
    return jax.nn.sigmoid(s)


def glorot_init(key, input_dim, output_dim):
    init_range = np.sqrt(6.0 / (input_dim + output_dim))
    return jax.random.uniform(key, (input_dim, output_dim), jnp.float32,
                              minval=-init_range, maxval=init_range)


if __name__ == "__main__":
    N, Din, H = 64, 64, 32          # nodes, input feature dim, hidden dim
    E_true = E_false = 256          # 512 edges -> two lane-dense 256-edge tiles

    key = jax.random.PRNGKey(0)
    kx, kadj, kw1, kw2, kw3, ke1, ke2 = jax.random.split(key, 7)

    # deterministic inputs
    x = jax.random.normal(kx, (N, Din), jnp.float32)
    a = (jax.random.uniform(kadj, (N, N)) > 0.8).astype(jnp.float32)
    a = jnp.clip(a + a.T + jnp.eye(N, dtype=jnp.float32), 0.0, 1.0)
    adj = a / jnp.sum(a, axis=1, keepdims=True)          # row-normalized adjacency

    # parameters (shapes from the module's __init__)
    weight = glorot_init(kw1, Din, H)                    # (input_dim, output_dim)
    weight_two = glorot_init(kw2, 2 * H, H)              # (2*H, H)
    weight_three = glorot_init(kw3, 2 * H, 1)            # (2*H, 1)

    # edge lists (int index pairs), as the torch forward receives them
    train_edges = jax.random.randint(ke1, (E_true, 2), 0, N, dtype=jnp.int32)
    train_false_edges = jax.random.randint(ke2, (E_false, 2), 0, N, dtype=jnp.int32)

    ref = forward_ref(x, adj, weight, weight_two, weight_three,
                      train_edges, train_false_edges)

    # f32 MXU-operand path: checked tight against the f32 reference.
    out_f32 = neural_encoder_decoder_forward(
        x, adj, weight, weight_two, weight_three, train_edges, train_false_edges,
        edge_tile=256, compute_dtype=jnp.float32)
    out_f32 = jax.block_until_ready(out_f32)
    np.testing.assert_allclose(np.asarray(out_f32), np.asarray(ref), rtol=1e-5, atol=1e-5)

    # bf16 MXU-operand path (performance default): f32 accumulation, relaxed tolerance.
    out_bf16 = neural_encoder_decoder_forward(
        x, adj, weight, weight_two, weight_three, train_edges, train_false_edges,
        edge_tile=256, compute_dtype=jnp.bfloat16)
    out_bf16 = jax.block_until_ready(out_bf16)
    np.testing.assert_allclose(np.asarray(out_bf16), np.asarray(ref), rtol=3e-2, atol=3e-2)

    print("KERNEL_OK")
</pallas_src>

<mosaic_0001>
module attributes {stable_mosaic.version = 11 : i64} {
  func.func @_xt_kernel(%arg0: i32, %arg1: memref<32x64xf32, #tpu.memory_space<vmem>>, %arg2: memref<64x64xf32, #tpu.memory_space<vmem>>, %arg3: memref<32x64xf32, #tpu.memory_space<vmem>>) attributes {dimension_semantics = [#tpu.dimension_semantics<parallel>], iteration_bounds = array<i64: 1>, scalar_prefetch = 0 : i64, scratch_operands = 0 : i64, tpu.core_type = #tpu.core_type<tc>, window_params = [{pipeline_mode = #tpu.pipeline_mode<synchronous>, transform_indices = @transform_0, window_bounds = array<i64: 32, 64>}, {transform_indices = @transform_1, window_bounds = array<i64: 64, 64>}, {transform_indices = @transform_2, window_bounds = array<i64: 32, 64>}]} {
    %c0 = arith.constant 0 : index
    %c0_0 = arith.constant 0 : index
    %0 = vector.load %arg1[%c0, %c0_0] : memref<32x64xf32, #tpu.memory_space<vmem>>, vector<32x64xf32>
    %c0_1 = arith.constant 0 : index
    %c0_2 = arith.constant 0 : index
    %1 = vector.load %arg2[%c0_1, %c0_2] : memref<64x64xf32, #tpu.memory_space<vmem>>, vector<64x64xf32>
    %cst = arith.constant dense<0.000000e+00> : vector<32x64xf32>
    %2 = tpu.matmul %0, %1, %cst {dimension_numbers = #tpu.dot_dimension_numbers<[1], [0], [0], [1], [0, 0, 1, 1], [], []>} : vector<32x64xf32>, vector<64x64xf32>, vector<32x64xf32> -> vector<32x64xf32>
    %c0_3 = arith.constant 0 : index
    %c0_4 = arith.constant 0 : index
    %3 = vector.load %arg3[%c0_3, %c0_4] : memref<32x64xf32, #tpu.memory_space<vmem>>, vector<32x64xf32>
    tpu.vector_store %arg3[%c0_3, %c0_4], %2 {strides = array<i32>} : memref<32x64xf32, #tpu.memory_space<vmem>>, vector<32x64xf32>,
    return
  }
  func.func @transform_0(%arg0: i32) -> (i32, i32) {
    %c0_i32 = arith.constant 0 : i32
    %c0_i32_0 = arith.constant 0 : i32
    %c0_i32_1 = arith.constant 0 : i32
    return %c0_i32, %c0_i32_0 : i32, i32
  }
  func.func @transform_1(%arg0: i32) -> (i32, i32) {
    %c0_i32 = arith.constant 0 : i32
    %c0_i32_0 = arith.constant 0 : i32
    return %c0_i32, %arg0 : i32, i32
  }
  func.func @transform_2(%arg0: i32) -> (i32, i32) {
    %c0_i32 = arith.constant 0 : i32
    %c0_i32_0 = arith.constant 0 : i32
    return %c0_i32, %arg0 : i32, i32
  }
}

</mosaic_0001>

<bundles_post_ra>
// kernel: tpu_custom_call.1
= control target key start
LH: loop header
LB: loop body
LE: loop exit
PB: predicated region body
PF: predicated region fallthrough
CT: control target
= control target key end

     0   :  { %7 = vsyncpa [#allocation3], 0  ;;  %s384_s0 = inlined_call_operand.hbm [shape: f32[32,64], index: 0, kind: input, shape index: {}]   ;;  %s385_s1 = inlined_call_operand.hbm [shape: f32[64,64], index: 1, kind: input, shape index: {}]   ;;  %s386_s2 = inlined_call_operand.hbm [shape: f32[32,64], index: 2, kind: output, shape index: {}]  }
   0x1   :  { %8 = vsyncpa [#allocation6], 0 }
   0x2   :  { %9 = vsyncpa [#allocation4], 0  ;;  %s311_s9 = smov [#allocation2]   ;;  %s239_s13 = scalar_lea.hbm %s384_s0, 512 }
   0x3   :  { %s15_s10 = sshll.u32 %s311_s9, 4  ;;  %p240_p0 = scmp.ne.s32.totalorder %s384_s0, %s239_s13  ;;  %s16_s10 = int_to_ptr.vmem [resolvable:$true] %s15_s10 }
   0x4   :  { %p243_p1 = scmp.lt.u32.totalorder %s239_s13, %s384_s0 }
   0x6   :  { %p245_p2 = pnand %p243_p1, %p240_p0 }
   0x8   :  { %248 = shalt.err (!%p245_p2)
}
   0x9   :  { %s249_s18 = scalar_lea.vmem %s16_s10, 512  ;;  %p254_p4 = scmp.lt.s32.totalorder %s16_s10, %s16_s10 }
   0xa   :  { %p250_p3 = scmp.ne.s32.totalorder %s16_s10, %s249_s18  ;;  %p255_p5 = scmp.lt.s32.totalorder %s249_s18, %s249_s18 }
   0xc   :  { %p256_p6 = por %p255_p5, %p254_p4 }
   0xe   :  { %p257_p7 = pnand %p256_p6, %p250_p3 }
  0x10   :  { %260 = shalt.err (!%p257_p7)
}
  0x11   :  { %s312_s19 = smov 128   ;;  %s313_s20 = smov 8  }
  0x12   :  { %21 = dma.hbm_to_vmem [thread:$0]  %s384_s0, 512, %s16_s10, [#allocation3], %s312_s19, %s312_s19, %s313_s20  }
  0x13   :  { %s314_s23 = smov [#allocation5]   ;;  %s261_s27 = scalar_lea.hbm %s385_s1, 1024 }
  0x14   :  { %s27_s24 = sshll.u32 %s314_s23, 4  ;;  %p262_p8 = scmp.ne.s32.totalorder %s385_s1, %s261_s27  ;;  %s28_s24 = int_to_ptr.vmem [resolvable:$true] %s27_s24 }
  0x15   :  { %p265_p9 = scmp.lt.u32.totalorder %s261_s27, %s385_s1 }
  0x17   :  { %p267_p10 = pnand %p265_p9, %p262_p8 }
  0x19   :  { %270 = shalt.err (!%p267_p10)
}
  0x1a   :  { %s271_s4 = scalar_lea.vmem %s28_s24, 1024  ;;  %p276_p12 = scmp.lt.s32.totalorder %s28_s24, %s28_s24 }
  0x1b   :  { %p272_p11 = scmp.ne.s32.totalorder %s28_s24, %s271_s4  ;;  %p277_p13 = scmp.lt.s32.totalorder %s271_s4, %s271_s4 }
  0x1d   :  { %p278_p0 = por %p277_p13, %p276_p12 }
  0x1f   :  { %p279_p1 = pnand %p278_p0, %p272_p11 }
  0x21   :  { %282 = shalt.err (!%p279_p1)
}
  0x22   :  { %33 = dma.hbm_to_vmem [thread:$0]  %s385_s1, 1024, %s28_s24, [#allocation6], %s312_s19, %s312_s19, %s313_s20  }
  0x23   :  { %305 = dma.done.wait [#allocation3], 512  }
  0x24   :  { %306 = vsyncadd [#allocation3], 4294966784 }
  0x25   :  { %307 = dma.done.wait [#allocation6], 1024  }
  0x26   :  { %308 = vsyncadd [#allocation6], 4294966272  ;;  %v44_v0 = vld [vmem:[#allocation5] sm:$0xff]  ;;  %v45_v1 = vld [vmem:[#allocation5 + $0x8] sm:$0xff]  ;;  %vm52_vm0 = vcmask 523264   ;;  %s315_s1 = smov [#allocation7]  }
  0x27   :  { %v46_v2 = vld [vmem:[#allocation5 + $0x10] sm:$0xff]  ;;  %v210_v3 = vpack.c.bf16 %v45_v1, %v44_v0  ;;  %v47_v4 = vld [vmem:[#allocation5 + $0x18] sm:$0xff]  ;;  %v48_v6 = vld [vmem:[#allocation5 + $0x20] sm:$0xff]  ;;  %s159_s6 = sshll.u32 %s315_s1, 4  ;;  %s160_s6 = int_to_ptr.vmem [resolvable:$true] %s159_s6 }
  0x28   :  { %v214_v5 = vpack.c.bf16 %v47_v4, %v46_v2  ;;  %v49_v7 = vld [vmem:[#allocation5 + $0x28] sm:$0xff]  ;;  %v40_v8 = vld [vmem:[#allocation2] sm:$0xff]  ;;  %v42_v9 = vld [vmem:[#allocation2 + $0x10] sm:$0xff]  ;;  %s283_s7 = scalar_lea.vmem %s160_s6, 512  ;;  %p288_p3 = scmp.lt.s32.totalorder %s160_s6, %s160_s6 }
  0x29   :  { %211 = vmatprep.subr.bf16.mxu0 %v210_v3  ;;  %226 = vmatprep.subr.bf16.mxu1 %v210_v3  ;;  %v218_v10 = vpack.c.bf16 %v49_v7, %v48_v6  ;;  %v50_v11 = vld [vmem:[#allocation5 + $0x30] sm:$0xff]  ;;  %v51_v12 = vld [vmem:[#allocation5 + $0x38] sm:$0xff]  ;;  %v41_v14 = vld [vmem:[#allocation2 + $0x8] sm:$0xff]  ;;  %p284_p2 = scmp.ne.s32.totalorder %s160_s6, %s283_s7  ;;  %p289_p4 = scmp.lt.s32.totalorder %s283_s7, %s283_s7 }
  0x2a   :  { %213 = vmatpush3.bf16.msra.mxu0 %v210_v3  ;;  %230 = vmatpush3.bf16.msra.mxu1 %v210_v3  ;;  %v222_v13 = vpack.c.bf16 %v51_v12, %v50_v11  ;;  %v43_v15 = vld [vmem:[#allocation2 + $0x18] sm:$0xff] }
  0x2b   :  { %215 = vmatprep.subr.bf16.mxu0 %v214_v5  ;;  %227 = vmatprep.subr.bf16.mxu1 %v214_v5  ;;  %p290_p5 = por %p289_p4, %p288_p3 }
  0x2c   :  { %204 = vmatprep.mubr.msk.f32.mxu0 %vm52_vm0, %v40_v8  ;;  %207 = vmatprep.mubr.msk.f32.mxu1 %vm52_vm0, %v42_v9 }
  0x2d   :  { %p291_p6 = pnand %p290_p5, %p284_p2 }
  0x2e   :  { %217 = vmatpush3.bf16.msra.mxu0 %v214_v5  ;;  %231 = vmatpush3.bf16.msra.mxu1 %v214_v5 }
  0x2f   :  { %219 = vmatprep.subr.bf16.mxu0 %v218_v10  ;;  %228 = vmatprep.subr.bf16.mxu1 %v218_v10 }
  0x32   :  { %221 = vmatpush3.bf16.msra.mxu0 %v218_v10  ;;  %232 = vmatpush3.bf16.msra.mxu1 %v218_v10 }
  0x33   :  { %223 = vmatprep.subr.bf16.mxu0 %v222_v13  ;;  %229 = vmatprep.subr.bf16.mxu1 %v222_v13 }
  0x36   :  { %225 = vmatpush3.bf16.msra.mxu0 %v222_v13  ;;  %233 = vmatpush3.bf16.msra.mxu1 %v222_v13 }
  0x39   :  { %205 = vmatmul.mubr.msk.f32.vlgmr.msra.gmra.mrb[0].mxu0 %vm52_vm0, %v41_v14  ;;  %208 = vmatmul.mubr.msk.f32.vlgmr.msra.gmra.mrb[0].mxu1 %vm52_vm0, %v43_v15 }
 0x10c   :  { %v206_v16 = vpop.f32.mrb[0].mxu0  ;;  %v209_v17 = vpop.f32.mrb[0].mxu1 }
 0x10d   :  { %151 = vst.msk [vmem:[#allocation7 + $0x8] sm:$0xff] %vm52_vm0, %v206_v16  ;;  %153 = vst.msk [vmem:[#allocation7 + $0x18] sm:$0xff] %vm52_vm0, %v209_v17  ;;  %v131_v18 = vpop.f32.mrb[1].mxu0  ;;  %v141_v19 = vpop.f32.mrb[1].mxu1 }
 0x10e   :  { %150 = vst.msk [vmem:[#allocation7] sm:$0xff] %vm52_vm0, %v131_v18  ;;  %152 = vst.msk [vmem:[#allocation7 + $0x10] sm:$0xff] %vm52_vm0, %v141_v19 }
 0x10f   :  { %294 = shalt.err (!%p291_p6)
}
 0x110   :  { %s295_s10 = scalar_lea.hbm %s386_s2, 512 }
 0x111   :  { %p296_p7 = scmp.ne.s32.totalorder %s386_s2, %s295_s10  ;;  %p299_p8 = scmp.lt.u32.totalorder %s295_s10, %s386_s2 }
 0x113   :  { %p301_p9 = pnand %p299_p8, %p296_p7 }
 0x115   :  { %304 = shalt.err (!%p301_p9)
}
 0x116   :  { %165 = dma.vmem_to_hbm [thread:$0]  %s160_s6, 512, %s386_s2, [#allocation4], %s312_s19, %s312_s19, %s313_s20  }
 0x117   :  { %309 = dma.done.wait [#allocation4], 512  }
 0x118   :  { %310 = vsyncadd [#allocation4], 4294966784 }
 0x119   :  { %169 = vsyncpa [#allocation3], 1 }
 0x11a   :  { %170 = vsyncpa [#allocation6], 1 }
 0x11b   :  { %171 = vsyncpa [#allocation4], 1 }

</bundles_post_ra>
